<compile_context>
chip_gen: v5e
topology: v5e:2x2
jax: 0.10.0
libtpu: 0.0.40
codegen_flags: <defaults>
</compile_context>

<pallas_src>
import math
import jax
import jax.numpy as jnp
from jax import lax
from jax.experimental import pallas as pl
from jax.experimental.pallas import tpu as pltpu


def _lorentz_pe_kernel(x_ref, ci_ref, cjm_ref, ni_ref, nj_ref, par_ref, w2t_ref,
                       o_ref, hs_ref):
    """One grid step: output rows [i*TI, (i+1)*TI), pair-chunk [j*TJ, (j+1)*TJ).

    Block shapes:
      x_ref   : (1, TI, D)  input features for the output rows (resident across j)
      ci_ref  : (1, TI, C)  4-vector coords of the output rows (resident across j)
      cjm_ref : (1, C, TJ)  metric-applied, transposed coords of the j chunk
      ni_ref  : (1, TI, 1)  Minkowski norms of the i rows (column layout)
      nj_ref  : (1, 1, TJ)  Minkowski norms of the j chunk (row layout)
      par_ref : (8, D)      packed params: 0=w1, 1=b1, 2=S*b2, 3=ln_gamma, 4=ln_beta
      w2t_ref : (D, D)      second Linear weight transposed (y = h @ w2.T)
      o_ref   : (1, TI, D)
      hs_ref  : (TI, D)     f32 VMEM accumulator, persistent across the j axis
    """
    j = pl.program_id(2)
    D = par_ref.shape[1]

    @pl.when(j == 0)
    def _init():
        hs_ref[...] = jnp.zeros_like(hs_ref)

    ci = ci_ref[0].astype(jnp.float32)       # (TI, C)
    cjm = cjm_ref[0].astype(jnp.float32)     # (C, TJ)  already multiplied by M
    n_i = ni_ref[0].astype(jnp.float32)      # (TI, 1)
    n_j = nj_ref[0].astype(jnp.float32)      # (1, TJ)

    # Lorentz interval as a lane-dense (TI, TJ) tile via the MXU Gram form:
    #   ld2[i,j] = (c_i - c_j)^T M (c_i - c_j) = n_i + n_j - 2 * c_i^T M c_j
    # TODO(synk): for very large, nearly-equal 4-vectors this Gram form can lose
    #   precision vs. the explicit-difference reference (catastrophic cancellation).
    g = lax.dot_general(ci, cjm, (((1,), (0,)), ((), ())),
                        preferred_element_type=jnp.float32)          # (TI, TJ)
    ld2 = n_i + n_j - 2.0 * g
    ld = jnp.sqrt(jnp.maximum(ld2, 0.0) + 1e-6)                      # (TI, TJ)

    # First Linear(1, D) + LeakyReLU(0.01), accumulated over the j chunk.
    w1 = par_ref[0:1, :].reshape(1, 1, D)
    b1 = par_ref[1:2, :].reshape(1, 1, D)
    h = ld[:, :, None] * w1 + b1                                     # (TI, TJ, D)
    h = jnp.where(h >= 0.0, h, 0.01 * h)
    hs_ref[...] += jnp.sum(h, axis=1)                                # (TI, D)

    # Last j chunk: second Linear, residual add, (identity) dropout, LayerNorm.
    @pl.when(j == pl.num_programs(2) - 1)
    def _finalize():
        b2s = par_ref[2:3, :]      # S * b2, folded in the wrapper
        ln_g = par_ref[3:4, :]
        ln_b = par_ref[4:5, :]
        pos = jnp.dot(hs_ref[...], w2t_ref[...],
                      preferred_element_type=jnp.float32) + b2s      # (TI, D)
        y = x_ref[0].astype(jnp.float32) + pos
        mean = jnp.mean(y, axis=-1, keepdims=True)
        var = jnp.mean((y - mean) ** 2, axis=-1, keepdims=True)
        yn = (y - mean) * lax.rsqrt(var + 1e-5)
        o_ref[0] = (yn * ln_g + ln_b).astype(o_ref.dtype)


def _vmem_capacity_bytes():
    """Physical VMEM of the current TPU generation (fallback: v7x-safe 64 MiB)."""
    try:
        return int(pltpu.get_tpu_info().vmem_capacity_bytes)
    except Exception:
        return 64 << 20


def _pick_tiles(batch, seq_len, d_model, vmem_cap_bytes):
    """Pick (TI, TJ), both dividing S.

    The dominant per-step buffer is the (TI, TJ, D) f32 LeakyReLU intermediate;
    its budget is derived from the physical VMEM of the generation we run on
    (so v5e/v6e get much larger tiles than v7x)."""
    divs = [d for d in range(seq_len, 0, -1) if seq_len % d == 0]
    # j (lane) chunk: whole sequence if small, else the largest divisor <= 256.
    tj = seq_len if seq_len <= 256 else next(d for d in divs if d <= 256)
    budget = max(1 << 20, min(vmem_cap_bytes // 8, 16 << 20))
    ti = next((d for d in divs
               if (d % 8 == 0 or d == seq_len) and d * tj * d_model * 4 <= budget),
              divs[-1])
    # v7x megacore: keep at least two "parallel" grid steps when batch == 1.
    if batch == 1 and seq_len // ti < 2:
        ti = next((d for d in divs if d < seq_len and d % 8 == 0), ti)
    return ti, tj


def lorentz_pos_encoding(x, x_coords, params, *, ti=None, tj=None):
    """Pallas forward for LorentzInvariantPositionalEncodingv2 (eval mode)."""
    B, S, D = x.shape
    C = x_coords.shape[-1]                          # 4-vector components
    f32 = jnp.float32

    vmem_cap = _vmem_capacity_bytes()
    auto_ti, auto_tj = _pick_tiles(B, S, D, vmem_cap)
    ti = auto_ti if ti is None else ti
    tj = auto_tj if tj is None else tj
    assert S % ti == 0 and S % tj == 0, "tiles must divide seq_len"

    # Wrapper-hoisted precompute (all cheap, runs once outside the kernel).
    coords = x_coords.astype(f32)
    sign = jnp.where(jnp.arange(C) == 0, -1.0, 1.0).astype(f32)     # diag(-1,+1,...)
    coords_m = coords * sign                                        # M @ c
    cjm_t = jnp.transpose(coords_m, (0, 2, 1))                      # (B, C, S) lane-dense j
    n = jnp.sum(coords * coords_m, axis=-1)                         # (B, S) Minkowski norms
    n_col = n[:, :, None]                                           # (B, S, 1)
    n_row = n[:, None, :]                                           # (B, 1, S)

    # Pack the small per-feature parameters into one sublane-aligned (8, D) block.
    packed = jnp.zeros((8, D), dtype=f32)
    packed = packed.at[0].set(params["w1"].reshape(D).astype(f32))
    packed = packed.at[1].set(params["b1"].reshape(D).astype(f32))
    packed = packed.at[2].set(float(S) * params["b2"].reshape(D).astype(f32))  # S*b2
    packed = packed.at[3].set(params["gamma"].reshape(D).astype(f32))
    packed = packed.at[4].set(params["beta"].reshape(D).astype(f32))
    w2t = params["w2"].T.astype(f32)                                # pos = hs @ w2.T

    grid = (B, S // ti, S // tj)
    out = pl.pallas_call(
        _lorentz_pe_kernel,
        out_shape=jax.ShapeDtypeStruct((B, S, D), x.dtype),
        grid_spec=pltpu.PrefetchScalarGridSpec(
            num_scalar_prefetch=0,
            grid=grid,
            in_specs=[
                pl.BlockSpec((1, ti, D), lambda b, i, j: (b, i, 0)),   # x rows i
                pl.BlockSpec((1, ti, C), lambda b, i, j: (b, i, 0)),   # coords rows i
                pl.BlockSpec((1, C, tj), lambda b, i, j: (b, 0, j)),   # M@coords^T, chunk j
                pl.BlockSpec((1, ti, 1), lambda b, i, j: (b, i, 0)),   # n_i column
                pl.BlockSpec((1, 1, tj), lambda b, i, j: (b, 0, j)),   # n_j row chunk
                pl.BlockSpec((8, D), lambda b, i, j: (0, 0)),          # packed small params
                pl.BlockSpec((D, D), lambda b, i, j: (0, 0)),          # w2^T
            ],
            out_specs=pl.BlockSpec((1, ti, D), lambda b, i, j: (b, i, 0)),
            scratch_shapes=[pltpu.VMEM((ti, D), jnp.float32)],
        ),
        compiler_params=pltpu.CompilerParams(
            dimension_semantics=("parallel", "parallel", "arbitrary"),
            vmem_limit_bytes=int(min(vmem_cap * 3 // 4, 96 << 20)),
        ),
    )(x, coords, cjm_t, n_col, n_row, packed, w2t)
    return out


def reference_jax(x, x_coords, params):
    """Pure-JAX mirror of the PyTorch forward (eval mode) for validation."""
    B, S, D = x.shape
    diff = x_coords[:, None, :, :] - x_coords[:, :, None, :]          # (B,S,S,C)
    ld = jnp.sum(diff[..., 1:] ** 2, axis=-1) - diff[..., 0] ** 2      # (B,S,S)
    ld = jnp.sqrt(jnp.maximum(ld, 0.0) + 1e-6)
    ldf = ld.reshape(B * S, S, 1)
    h = ldf @ params["w1"].T + params["b1"]
    h = jnp.where(h >= 0, h, 0.01 * h)
    h = h @ params["w2"].T + params["b2"]
    pos = h.reshape(B, S, S, D).sum(axis=2)
    y = x + pos
    mean = y.mean(-1, keepdims=True)
    var = ((y - mean) ** 2).mean(-1, keepdims=True)
    return (y - mean) / jnp.sqrt(var + 1e-5) * params["gamma"] + params["beta"]


if __name__ == "__main__":
    B, S, D = 2, 8, 32          # batch, seq_len, d_model
    key = jax.random.PRNGKey(0)
    kx, kc, k1, k2, k3, k4 = jax.random.split(key, 6)

    x = jax.random.normal(kx, (B, S, D), dtype=jnp.float32)
    x_coords = jax.random.normal(kc, (B, S, 4), dtype=jnp.float32)

    # Deterministic synthetic parameters (shapes from the module's __init__).
    params = {
        "w1": jax.random.normal(k1, (D, 1), dtype=jnp.float32) * 0.5,           # Linear(1, D).weight
        "b1": jax.random.normal(k2, (D,), dtype=jnp.float32) * 0.1,             # Linear(1, D).bias
        "w2": jax.random.normal(k3, (D, D), dtype=jnp.float32) / math.sqrt(D),  # Linear(D, D).weight
        "b2": jax.random.normal(k4, (D,), dtype=jnp.float32) * 0.1,             # Linear(D, D).bias
        "gamma": jnp.ones((D,), dtype=jnp.float32),                             # LayerNorm.weight
        "beta": jnp.zeros((D,), dtype=jnp.float32),                             # LayerNorm.bias
    }

    out = jax.block_until_ready(lorentz_pos_encoding(x, x_coords, params))
    ref = jax.block_until_ready(reference_jax(x, x_coords, params))

    assert out.shape == (B, S, D)
    assert out.dtype == jnp.float32
    assert jnp.allclose(out, ref, atol=2e-3, rtol=2e-3), (
        "mismatch vs. reference, max abs diff = %g" % float(jnp.max(jnp.abs(out - ref))))
    print("KERNEL_OK")
</pallas_src>

<mosaic_0001>
module attributes {stable_mosaic.version = 11 : i64} {
  func.func @_lorentz_pe_kernel(%arg0: i32, %arg1: i32, %arg2: i32, %arg3: memref<1x8x32xf32, #tpu.memory_space<vmem>>, %arg4: memref<1x8x4xf32, #tpu.memory_space<vmem>>, %arg5: memref<1x4x8xf32, #tpu.memory_space<vmem>>, %arg6: memref<1x8x1xf32, #tpu.memory_space<vmem>>, %arg7: memref<1x1x8xf32, #tpu.memory_space<vmem>>, %arg8: memref<8x32xf32, #tpu.memory_space<vmem>>, %arg9: memref<32x32xf32, #tpu.memory_space<vmem>>, %arg10: memref<1x8x32xf32, #tpu.memory_space<vmem>>, %arg11: memref<8x32xf32, #tpu.memory_space<vmem>>) attributes {dimension_semantics = [#tpu.dimension_semantics<parallel>, #tpu.dimension_semantics<parallel>, #tpu.dimension_semantics<arbitrary>], iteration_bounds = array<i64: 2, 1, 1>, scalar_prefetch = 0 : i64, scratch_operands = 1 : i64, tpu.core_type = #tpu.core_type<tc>, window_params = [{transform_indices = @transform_0, window_bounds = array<i64: 1, 8, 32>}, {transform_indices = @transform_1, window_bounds = array<i64: 1, 8, 4>}, {transform_indices = @transform_2, window_bounds = array<i64: 1, 4, 8>}, {transform_indices = @transform_3, window_bounds = array<i64: 1, 8, 1>}, {transform_indices = @transform_4, window_bounds = array<i64: 1, 1, 8>}, {pipeline_mode = #tpu.pipeline_mode<synchronous>, transform_indices = @transform_5, window_bounds = array<i64: 8, 32>}, {pipeline_mode = #tpu.pipeline_mode<synchronous>, transform_indices = @transform_6, window_bounds = array<i64: 32, 32>}, {transform_indices = @transform_7, window_bounds = array<i64: 1, 8, 32>}]} {
    %c0_i32 = arith.constant 0 : i32
    %0 = arith.cmpi eq, %arg2, %c0_i32 : i32
    %1 = arith.extui %0 : i1 to i32
    %c0_i32_0 = arith.constant 0 : i32
    %2 = arith.cmpi ne, %1, %c0_i32_0 : i32
    scf.if %2 {
      %cst_27 = arith.constant 0.000000e+00 : f32
      %45 = vector.broadcast %cst_27 : f32 to vector<8x32xf32>
      %c0_28 = arith.constant 0 : index
      %c0_29 = arith.constant 0 : index
      %46 = vector.load %arg11[%c0_28, %c0_29] : memref<8x32xf32, #tpu.memory_space<vmem>>, vector<8x32xf32>
      tpu.vector_store %arg11[%c0_28, %c0_29], %45 {strides = array<i32>} : memref<8x32xf32, #tpu.memory_space<vmem>>, vector<8x32xf32>,
    } else {
    }
    %c0 = arith.constant 0 : index
    %c0_1 = arith.constant 0 : index
    %c0_2 = arith.constant 0 : index
    %3 = vector.load %arg4[%c0, %c0_1, %c0_2] : memref<1x8x4xf32, #tpu.memory_space<vmem>>, vector<1x8x4xf32>
    %4 = vector.shape_cast %3 : vector<1x8x4xf32> to vector<8x4xf32>
    %c0_3 = arith.constant 0 : index
    %c0_4 = arith.constant 0 : index
    %c0_5 = arith.constant 0 : index
    %5 = vector.load %arg5[%c0_3, %c0_4, %c0_5] : memref<1x4x8xf32, #tpu.memory_space<vmem>>, vector<1x4x8xf32>
    %6 = vector.shape_cast %5 : vector<1x4x8xf32> to vector<4x8xf32>
    %c0_6 = arith.constant 0 : index
    %c0_7 = arith.constant 0 : index
    %c0_8 = arith.constant 0 : index
    %7 = vector.load %arg6[%c0_6, %c0_7, %c0_8] : memref<1x8x1xf32, #tpu.memory_space<vmem>>, vector<1x8x1xf32>
    %8 = vector.shape_cast %7 : vector<1x8x1xf32> to vector<8x1xf32>
    %c0_9 = arith.constant 0 : index
    %c0_10 = arith.constant 0 : index
    %c0_11 = arith.constant 0 : index
    %9 = vector.load %arg7[%c0_9, %c0_10, %c0_11] : memref<1x1x8xf32, #tpu.memory_space<vmem>>, vector<1x1x8xf32>
    %10 = vector.shape_cast %9 : vector<1x1x8xf32> to vector<1x8xf32>
    %cst = arith.constant dense<0.000000e+00> : vector<8x8xf32>
    %11 = tpu.matmul %4, %6, %cst {dimension_numbers = #tpu.dot_dimension_numbers<[1], [0], [0], [1], [0, 0, 1, 1], [], []>} : vector<8x4xf32>, vector<4x8xf32>, vector<8x8xf32> -> vector<8x8xf32>
    %12 = vector.broadcast %8 : vector<8x1xf32> to vector<8x8xf32>
    %13 = vector.broadcast %10 : vector<1x8xf32> to vector<8x8xf32>
    %14 = arith.addf %12, %13 : vector<8x8xf32>
    %cst_12 = arith.constant 2.000000e+00 : f32
    %15 = vector.broadcast %cst_12 : f32 to vector<8x8xf32>
    %16 = arith.mulf %15, %11 : vector<8x8xf32>
    %17 = arith.subf %14, %16 : vector<8x8xf32>
    %cst_13 = arith.constant 0.000000e+00 : f32
    %18 = vector.broadcast %cst_13 : f32 to vector<8x8xf32>
    %19 = arith.maximumf %17, %18 : vector<8x8xf32>
    %cst_14 = arith.constant 9.99999997E-7 : f32
    %20 = vector.broadcast %cst_14 : f32 to vector<8x8xf32>
    %21 = arith.addf %19, %20 : vector<8x8xf32>
    %22 = math.sqrt %21 : vector<8x8xf32>
    %c0_15 = arith.constant 0 : index
    %c0_16 = arith.constant 0 : index
    %23 = vector.load %arg8[%c0_15, %c0_16] : memref<8x32xf32, #tpu.memory_space<vmem>>, vector<1x32xf32>
    %24 = vector.shape_cast %23 : vector<1x32xf32> to vector<1x1x32xf32>
    %c1 = arith.constant 1 : index
    %c0_17 = arith.constant 0 : index
    %25 = vector.load %arg8[%c1, %c0_17] : memref<8x32xf32, #tpu.memory_space<vmem>>, vector<1x32xf32>
    %26 = vector.shape_cast %25 : vector<1x32xf32> to vector<1x1x32xf32>
    %27 = vector.shape_cast %22 : vector<8x8xf32> to vector<8x8x1xf32>
    %28 = vector.broadcast %27 : vector<8x8x1xf32> to vector<8x8x32xf32>
    %29 = vector.broadcast %24 : vector<1x1x32xf32> to vector<8x8x32xf32>
    %30 = arith.mulf %28, %29 : vector<8x8x32xf32>
    %31 = vector.broadcast %26 : vector<1x1x32xf32> to vector<8x8x32xf32>
    %32 = arith.addf %30, %31 : vector<8x8x32xf32>
    %cst_18 = arith.constant 0.000000e+00 : f32
    %33 = vector.broadcast %cst_18 : f32 to vector<8x8x32xf32>
    %34 = arith.cmpf oge, %32, %33 : vector<8x8x32xf32>
    %cst_19 = arith.constant 0.00999999977 : f32
    %35 = vector.broadcast %cst_19 : f32 to vector<8x8x32xf32>
    %36 = arith.mulf %35, %32 : vector<8x8x32xf32>
    %37 = arith.select %34, %32, %36 : vector<8x8x32xi1>, vector<8x8x32xf32>
    %c0_20 = arith.constant 0 : index
    %c0_21 = arith.constant 0 : index
    %38 = vector.load %arg11[%c0_20, %c0_21] : memref<8x32xf32, #tpu.memory_space<vmem>>, vector<8x32xf32>
    %cst_22 = arith.constant dense<0.000000e+00> : vector<8x32xf32>
    %39 = vector.multi_reduction <add>, %37, %cst_22 [1] : vector<8x8x32xf32> to vector<8x32xf32>
    %40 = arith.addf %38, %39 : vector<8x32xf32>
    %c0_23 = arith.constant 0 : index
    %c0_24 = arith.constant 0 : index
    %41 = vector.load %arg11[%c0_23, %c0_24] : memref<8x32xf32, #tpu.memory_space<vmem>>, vector<8x32xf32>
    tpu.vector_store %arg11[%c0_23, %c0_24], %40 {strides = array<i32>} : memref<8x32xf32, #tpu.memory_space<vmem>>, vector<8x32xf32>,
    %c0_i32_25 = arith.constant 0 : i32
    %42 = arith.cmpi eq, %arg2, %c0_i32_25 : i32
    %43 = arith.extui %42 : i1 to i32
    %c0_i32_26 = arith.constant 0 : i32
    %44 = arith.cmpi ne, %43, %c0_i32_26 : i32
    scf.if %44 {
      %c2 = arith.constant 2 : index
      %c0_27 = arith.constant 0 : index
      %45 = vector.load %arg8[%c2, %c0_27] : memref<8x32xf32, #tpu.memory_space<vmem>>, vector<1x32xf32>
      %c3 = arith.constant 3 : index
      %c0_28 = arith.constant 0 : index
      %46 = vector.load %arg8[%c3, %c0_28] : memref<8x32xf32, #tpu.memory_space<vmem>>, vector<1x32xf32>
      %c4 = arith.constant 4 : index
      %c0_29 = arith.constant 0 : index
      %47 = vector.load %arg8[%c4, %c0_29] : memref<8x32xf32, #tpu.memory_space<vmem>>, vector<1x32xf32>
      %c0_30 = arith.constant 0 : index
      %c0_31 = arith.constant 0 : index
      %48 = vector.load %arg11[%c0_30, %c0_31] : memref<8x32xf32, #tpu.memory_space<vmem>>, vector<8x32xf32>
      %c0_32 = arith.constant 0 : index
      %c0_33 = arith.constant 0 : index
      %49 = vector.load %arg9[%c0_32, %c0_33] : memref<32x32xf32, #tpu.memory_space<vmem>>, vector<32x32xf32>
      %cst_34 = arith.constant dense<0.000000e+00> : vector<8x32xf32>
      %50 = tpu.matmul %48, %49, %cst_34 {dimension_numbers = #tpu.dot_dimension_numbers<[1], [0], [0], [1], [0, 0, 1, 1], [], []>} : vector<8x32xf32>, vector<32x32xf32>, vector<8x32xf32> -> vector<8x32xf32>
      %51 = vector.broadcast %45 : vector<1x32xf32> to vector<8x32xf32>
      %52 = arith.addf %50, %51 : vector<8x32xf32>
      %c0_35 = arith.constant 0 : index
      %c0_36 = arith.constant 0 : index
      %c0_37 = arith.constant 0 : index
      %53 = vector.load %arg3[%c0_35, %c0_36, %c0_37] : memref<1x8x32xf32, #tpu.memory_space<vmem>>, vector<1x8x32xf32>
      %54 = vector.shape_cast %53 : vector<1x8x32xf32> to vector<8x32xf32>
      %55 = arith.addf %54, %52 : vector<8x32xf32>
      %cst_38 = arith.constant dense<0.000000e+00> : vector<8xf32>
      %56 = vector.multi_reduction <add>, %55, %cst_38 [1] : vector<8x32xf32> to vector<8xf32>
      %57 = vector.shape_cast %56 : vector<8xf32> to vector<8x1xf32>
      %cst_39 = arith.constant 3.200000e+01 : f32
      %58 = vector.broadcast %cst_39 : f32 to vector<8x1xf32>
      %59 = arith.divf %57, %58 : vector<8x1xf32>
      %60 = vector.broadcast %59 : vector<8x1xf32> to vector<8x32xf32>
      %61 = arith.subf %55, %60 : vector<8x32xf32>
      %62 = arith.mulf %61, %61 : vector<8x32xf32>
      %cst_40 = arith.constant dense<0.000000e+00> : vector<8xf32>
      %63 = vector.multi_reduction <add>, %62, %cst_40 [1] : vector<8x32xf32> to vector<8xf32>
      %64 = vector.shape_cast %63 : vector<8xf32> to vector<8x1xf32>
      %cst_41 = arith.constant 3.200000e+01 : f32
      %65 = vector.broadcast %cst_41 : f32 to vector<8x1xf32>
      %66 = arith.divf %64, %65 : vector<8x1xf32>
      %67 = vector.broadcast %59 : vector<8x1xf32> to vector<8x32xf32>
      %68 = arith.subf %55, %67 : vector<8x32xf32>
      %cst_42 = arith.constant 9.99999974E-6 : f32
      %69 = vector.broadcast %cst_42 : f32 to vector<8x1xf32>
      %70 = arith.addf %66, %69 : vector<8x1xf32>
      %71 = math.rsqrt %70 : vector<8x1xf32>
      %72 = vector.broadcast %71 : vector<8x1xf32> to vector<8x32xf32>
      %73 = arith.mulf %68, %72 : vector<8x32xf32>
      %74 = vector.broadcast %46 : vector<1x32xf32> to vector<8x32xf32>
      %75 = arith.mulf %73, %74 : vector<8x32xf32>
      %76 = vector.broadcast %47 : vector<1x32xf32> to vector<8x32xf32>
      %77 = arith.addf %75, %76 : vector<8x32xf32>
      %c0_43 = arith.constant 0 : index
      %c0_44 = arith.constant 0 : index
      %c0_45 = arith.constant 0 : index
      %78 = vector.load %arg10[%c0_43, %c0_44, %c0_45] : memref<1x8x32xf32, #tpu.memory_space<vmem>>, vector<1x8x32xf32>
      %79 = vector.shape_cast %78 : vector<1x8x32xf32> to vector<8x32xf32>
      %80 = vector.shape_cast %77 : vector<8x32xf32> to vector<1x8x32xf32>
      tpu.vector_store %arg10[%c0_43, %c0_44, %c0_45], %80 {strides = array<i32>} : memref<1x8x32xf32, #tpu.memory_space<vmem>>, vector<1x8x32xf32>,
    } else {
    }
    return
  }
  func.func @transform_0(%arg0: i32, %arg1: i32, %arg2: i32) -> (i32, i32, i32) {
    %c0_i32 = arith.constant 0 : i32
    %c0_i32_0 = arith.constant 0 : i32
    return %arg0, %arg1, %c0_i32 : i32, i32, i32
  }
  func.func @transform_1(%arg0: i32, %arg1: i32, %arg2: i32) -> (i32, i32, i32) {
    %c0_i32 = arith.constant 0 : i32
    %c0_i32_0 = arith.constant 0 : i32
    return %arg0, %arg1, %c0_i32 : i32, i32, i32
  }
  func.func @transform_2(%arg0: i32, %arg1: i32, %arg2: i32) -> (i32, i32, i32) {
    %c0_i32 = arith.constant 0 : i32
    %c0_i32_0 = arith.constant 0 : i32
    return %arg0, %c0_i32, %arg2 : i32, i32, i32
  }
  func.func @transform_3(%arg0: i32, %arg1: i32, %arg2: i32) -> (i32, i32, i32) {
    %c0_i32 = arith.constant 0 : i32
    %c0_i32_0 = arith.constant 0 : i32
    return %arg0, %arg1, %c0_i32 : i32, i32, i32
  }
  func.func @transform_4(%arg0: i32, %arg1: i32, %arg2: i32) -> (i32, i32, i32) {
    %c0_i32 = arith.constant 0 : i32
    %c0_i32_0 = arith.constant 0 : i32
    return %arg0, %c0_i32, %arg2 : i32, i32, i32
  }
  func.func @transform_5(%arg0: i32, %arg1: i32, %arg2: i32) -> (i32, i32) {
    %c0_i32 = arith.constant 0 : i32
    %c0_i32_0 = arith.constant 0 : i32
    %c0_i32_1 = arith.constant 0 : i32
    return %c0_i32, %c0_i32_0 : i32, i32
  }
  func.func @transform_6(%arg0: i32, %arg1: i32, %arg2: i32) -> (i32, i32) {
    %c0_i32 = arith.constant 0 : i32
    %c0_i32_0 = arith.constant 0 : i32
    %c0_i32_1 = arith.constant 0 : i32
    return %c0_i32, %c0_i32_0 : i32, i32
  }
  func.func @transform_7(%arg0: i32, %arg1: i32, %arg2: i32) -> (i32, i32, i32) {
    %c0_i32 = arith.constant 0 : i32
    %c0_i32_0 = arith.constant 0 : i32
    return %arg0, %arg1, %c0_i32 : i32, i32, i32
  }
}

</mosaic_0001>

<bundles_post_ra>
// kernel: tpu_custom_call.1
= control target key start
LH: loop header
LB: loop body
LE: loop exit
PB: predicated region body
PF: predicated region fallthrough
CT: control target
= control target key end

     0   :  { %s1449_s0 = inlined_call_operand.hbm [shape: f32[2,8,32], index: 0, kind: input, shape index: {}]   ;;  %s1450_s1 = inlined_call_operand.vmem [shape: f32[2,8,4], index: 1, kind: input, shape index: {}]   ;;  %s1451_s2 = inlined_call_operand.vmem [shape: f32[2,4,8], index: 2, kind: input, shape index: {}]   ;;  %s1452_s3 = inlined_call_operand.vmem [shape: f32[2,8,1], index: 3, kind: input, shape index: {}]   ;;  %s1453_s4 = inlined_call_operand.vmem [shape: f32[2,1,8], index: 4, kind: input, shape index: {}]   ;;  %s1454_s5 = inlined_call_operand.hbm [shape: f32[8,32], index: 5, kind: input, shape index: {}]   ;;  %s1455_s6 = inlined_call_operand.vmem [shape: f32[32,32], index: 6, kind: input, shape index: {}]   ;;  %s1456_s7 = inlined_call_operand.hbm [shape: f32[2,8,32], index: 7, kind: output, shape index: {}]  }
   0x1   :  { %1460 = sst [smem:[#allocation14_spill]] %s1449_s0 }
   0x2   :  { %1461 = sst [smem:[#allocation15_spill]] %s1454_s5 }
   0x3   :  { %12 = vsyncpa [#allocation4], 0 }
   0x4   :  { %14 = vsyncpa [#allocation4 + $0x1], 0 }
   0x5   :  { %15 = vsyncpa [#allocation7], 0 }
   0x6   :  { %16 = vsyncpa [#allocation5], 0 }
   0x7   :  { %18 = vsyncpa [#allocation5 + $0x1], 0  ;;  %s1233_s24 = smov 0   ;;  %s1235_s25 = smov 0  }
   0x8   :  { %s1237_s26 = smov 0   ;;  %s1239_s27 = smov 0  }
   0x9   :  { %s1241_s28 = smov 0   ;;  %s1243_s29 = smov 0  }
   0xa LB: > { %1462 = sst [smem:[#allocation12_spill]] %s1167_s24  ;;  %s928_s30 = sadd.s32 4294967295, %s1187_s29   ;;  %s1187_s29 = sphi %s1243_s29, %s24_s29   ;;  %s1183_s28 = sphi %s1241_s28, %s1480_s28   ;;  %s1179_s27 = sphi %s1239_s27, %s1479_s27   ;;  %s1175_s26 = sphi %s1237_s26, %s1478_s26   ;;  %s1171_s25 = sphi %s1235_s25, %s1477_s25   ;;  %s1167_s24 = sphi %s1233_s24, %s1476_s24  }
   0xb   : > { %s929_s8 = sadd.s32 4294967294, %s1187_s29   ;;  %p65_p0 = scmp.ne.s32.totalorder %s1171_s25, %s1167_s24 }
   0xc   : > { %p1267_p1 = scmp.eq.s32.totalorder %s928_s30, 0  ;;  %p1271_p2 = scmp.eq.s32.totalorder %s928_s30, 1 }
   0xd   : > { %p251_p3 = scmp.eq.s32.totalorder %s929_s8, 1  ;;  %p930_p5 = scmp.ge.s32.totalorder %s1187_s29, 1 }
   0xe   : > { %p1277_p4 = por %p1267_p1, %p65_p0  ;;  %p258_p7 = scmp.lt.s32.totalorder %s1187_s29, 3 }
   0xf   : > { %p1282_p6 = por %p251_p3, %p65_p0  ;;  %s1468_s5 = sld [smem:[#allocation15_spill]] }
  0x10   : > { %p1290_p8 = pnand %p930_p5, %p258_p7  ;;  %p932_p9 = scmp.ge.s32.totalorder %s1187_s29, 2 }
  0x11   : > { %s1466_s12 = scalar_select %p1282_p6, 1, 0 }
  0x12   : > { %p957_p10 = pneg %p1290_p8  ;;  %s1189_s17 = smov [#allocation6]  }
  0x13   : > { %1467 = sst [smem:[#allocation13_spill]] %s1466_s12  ;;  %s272_s18 = sshll.u32 %s1189_s17, 4  ;;  %s273_s18 = int_to_ptr.vmem [resolvable:$true] %s272_s18 }
  0x14   : > { %p958_p11 = pnand %p957_p10, %p1267_p1  ;;  %s43_s19 = sadd.s32 1, %s1183_s28 }
  0x15   : > { %s270_s15 = sshll.u32 %s1468_s5, 4  ;;  %p45_p12 = scmp.ge.s32.totalorder %s43_s19, 2  ;;  %s271_s15 = int_to_ptr.hbm [resolvable:$true] %s270_s15 }
  0x16   : > { %960 = dma.hbm_to_vmem [thread:$0]  (!%p958_p11), %s271_s15, 128, %s273_s18, [#allocation7]  }
  0x17   : > { %s52_s20 = sadd.s32 1, %s1175_s26  ;;  %p59_p13 = scmp.ne.s32.totalorder %s1175_s26, %s1171_s25 }
  0x18   : > { %p60_p0 = scmp.eq.s32.totalorder %s1187_s29, 0  ;;  %s1482_s19 = smov (%p45_p12, %s43_s19), 0 }
  0x19   : > { %p1312_p5 = por %p1271_p2, %p59_p13  ;;  %s47_s23 = ssub.s32 %s1183_s28, %s1482_s19 }
  0x1a   : > { %p1306_p3 = por %p60_p0, %p59_p13  ;;  %p970_p7 = scmp.lt.s32.totalorder %s1187_s29, 2 }
  0x1b   : > { %p50_p10 = scmp.eq.s32.totalorder %s47_s23, 0  ;;  %s286_s30 = sand.u32 1, %s1175_s26  }
  0x1c   : > { %s933_s8 = sshll.u32 %s286_s30, 3  ;;  %s934_s14 = sshll.u32 %s1183_s28, 3 }
  0x1d   : > { %s1321_s13 = scalar_select %p50_p10, %s1175_s26, %s52_s20  }
  0x1e   : > { %s1472_s0 = sld [smem:[#allocation14_spill]]  ;;  %s290_s5 = scalar_lea.vmem [#allocation3], %s933_s8 }
  0x1f   : > { %s299_s12 = sshll.u32 %s290_s5, 4  ;;  %p962_p2 = pnand %p970_p7, %p1306_p3  ;;  %s300_s12 = int_to_ptr.vmem [resolvable:$true] %s299_s12 }
  0x20   : > { %s287_s24 = scalar_lea.sflag [#allocation4], %s286_s30  ;;  %s1332_s20 = sand.u32 (!%p1290_p8), 1, %s1171_s25  }
  0x21   : > { %s1459_s23 = sshll.u32 (!%p1290_p8), %s1332_s20, 3  ;;  %s350_s8 = scalar_lea.sflag (!%p1290_p8), [#allocation4], %s1332_s20 }
  0x22   : > { %347 = sbr.rel (%p1290_p8) target bundleno = 772 (0x304), region = 48  ;;  %s1338_s5 = scalar_lea.vmem (!%p1290_p8), [#allocation3], %s1459_s23 }
  0x24   : > { %s295_s18 = scalar_lea.hbm %s1472_s0, %s934_s14 }
  0x25   : > { %s297_s10 = sshll.u32 %s295_s18, 4  ;;  %s298_s10 = int_to_ptr.hbm [resolvable:$true] %s297_s10 }
  0x26   : > { %964 = dma.hbm_to_vmem [thread:$0]  (!%p962_p2), %s298_s10, 128, %s300_s12, %s287_s24  }
  0x27   : > { %1154 = dma.done.wait (%p1277_p4), %s350_s8, 128  }
  0x28   : > { %1156 = vsyncadd (%p1277_p4), %s350_s8, 4294967168 }
  0x29   : > { %1158 = dma.done.wait (%p1267_p1), [#allocation7], 128  }
  0x2a   : > { %1160 = vsyncadd (%p1267_p1), [#allocation7], 4294967168  ;;  %p417_p8 = scmp.lt.s32.totalorder %s1179_s27, 1  ;;  %v1190_v0 = vmov 0   ;;  %vm458_vm0 = vcmask 1043456   ;;  %vm454_vm1 = vcmask 31744   ;;  %v510_v4 = vlaneseq }
  0x2b   : > { %1025 = vset.pattern.permute.xlu0 %v1190_v0  ;;  %v1362_v34 = vld [vmem:[#allocation6] ss:$0 sm:$0xff]  ;;  %v1364_v35 = vld [vmem:[#allocation6 + $0x1] ss:$0 sm:$0xff]  ;;  %vm448_vm4 = vcmask 261120   ;;  %v1191_v41 = vmov 0.0  }
  0x2c   : > { %s418_s24 = scalar_select %p417_p8, %s1179_s27, 1  ;;  %v511_v5 = vshrl.u32 %v510_v4, 7  ;;  %449 = vst.msk [vmem:[#allocation2] sm:$0xff] %vm448_vm4, %v1191_v41  ;;  %vm673_vm13 = vcmask 1041409   ;;  %vm675_vm14 = vcmask 1042434   ;;  %vm677_vm15 = vcmask 1043459  }
  0x2d   : > { %s1473_s9 = sshll.u32 %s1332_s20, 3 }
  0x2e   : > { %s940_s12 = sshll.u32 %s418_s24, 2  ;;  %s939_s16 = sshll.u32 %s418_s24, 3  ;;  %1028 = vset.pattern.permute.xlu2 %v511_v5  ;;  %1027 = vset.pattern.permute.xlu1 %v511_v5 }
  0x2f   : > { %s430_s14 = scalar_lea.vmem %s1451_s2, %s940_s12  ;;  %s423_s17 = scalar_lea.vmem %s1450_s1, %s939_s16 }
  0x30   : > { %s437_s10 = scalar_lea.vmem %s1452_s3, %s939_s16  ;;  %v451_v1 = vld [vmem:[%s430_s14] sm:$0xf]  ;;  %s443_s0 = scalar_lea.vmem %s1453_s4, %s418_s24 }
  0x31   : > { %v450_v2 = vld [vmem:[%s423_s17] sm:$0xff]  ;;  %942 = vmatpush.msk.msra.mxu0 %vm458_vm0, %v451_v1  ;;  %vm679_vm0 = vcmask 1044484   ;;  %s416_s18 = scalar_lea.vmem [#allocation8], %s1473_s9  ;;  %s1121_s16 = scalar_lea.hbm %s1456_s7, 16 }
  0x32   : > { %v452_v3 = vld [vmem:[%s437_s10] sm:$0xff]  ;;  %943 = vmatmul.msk.f32.vlgmr.msra.gmra.mxu0 %vm454_vm1, %v450_v2  ;;  %vm681_vm1 = vcmask 1045509   ;;  %s775_s10 = sshll.u32 %s416_s18, 4  ;;  %s776_s10 = int_to_ptr.vmem [resolvable:$true] %s775_s10 }
  0x33   : > { %484 = vperm.xlu0 %1025, %v452_v3   ;;  %v1029_v6 = vld [vmem:[%s443_s0] ss:$0 sm:$0xff] }
  0x3b   : > { %1026 = vset.pattern.permute.xlu0 %v511_v5  ;;  %v700_v5 = vld [vmem:[%s1455_s6 + $0x18] sm:$0xff] }
  0x3c   : > { %717 = vmatpush.msra.mxu1 %v700_v5 }
  0xa5   : > { %v485_v7 = vpop.permute.xlu0 %484 }
  0xa6   : > { %v490_v8 = vadd.f32 %v1029_v6, %v485_v7  ;;  %v699_v6 = vld [vmem:[%s1455_s6 + $0x10] sm:$0xff] }
  0xa7   : > { %718 = vmatpush.msra.mxu1 %v699_v6 }
  0xaf   : > { %v479_v9 = vpop.f32.mrf.mxu0 }
  0xb0   : > { %v491_v10 = vmul.f32 2.0, %v479_v9 }
  0xb2   : > { %v492_v11 = vsub.f32 %v490_v8, %v491_v10 }
  0xb4   : > { %v493_v12 = vmax.f32 %v492_v11, 0.0 }
  0xb6   : > { %v494_v13 = vadd.f32 1e-06, %v493_v12 }
  0xb8   : > { %1035 = vrsqrt.f32 %v494_v13  ;;  %vm502_vm2 = vcmp.eq.f32.partialorder %v494_v13, inf  ;;  %v505_v21 = vand.u32 2147483648, %v494_v13  ;;  %vm504_vm3 = vcmp.eq.f32.partialorder %v494_v13, 0.0 }
  0xbe   : > { %v1036_v14 = vpop.eup %1035 }
  0xbf   : > { %v496_v15 = vmul.f32 %v1036_v14, %v494_v13 }
  0xc1   : > { %v497_v16 = vmul.f32 %v1036_v14, %v496_v15 }
  0xc3   : > { %v498_v17 = vmul.f32 0.5, %v497_v16 }
  0xc5   : > { %v499_v18 = vsub.f32 1.5, %v498_v17 }
  0xc7   : > { %v500_v19 = vmul.f32 %v1036_v14, %v499_v18  ;;  %v698_v14 = vld [vmem:[%s1455_s6 + $0x8] sm:$0xff] }
  0xc8   : > { %719 = vmatpush.msra.mxu1 %v698_v14 }
  0xc9   : > { %v501_v20 = vmul.f32 %v500_v19, %v494_v13 }
  0xcb   : > { %v503_v22 = vsel %vm502_vm2, %v494_v13, %v501_v20  ;;  %v697_v20 = vld [vmem:[%s1455_s6] sm:$0xff]  ;;  %vm683_vm2 = vcmask 1046534  }
  0xcc   : > { %v506_v23 = vsel %vm504_vm3, %v505_v21, %v503_v22  ;;  %720 = vmatpush.msra.mxu1 %v697_v20  ;;  %vm685_vm3 = vcmask 1047559  }
  0xcd   : > { %v530_v24 = vperm.slane %v506_v23, 3  ;;  %v516_v25 = vperm.slane %v506_v23, 1  ;;  %v509_v26 = vperm.slane %v506_v23, 0  ;;  %v537_v27 = vperm.slane %v506_v23, 4 }
  0xce   : > { %v523_v28 = vperm.slane %v506_v23, 2  ;;  %v558_v29 = vperm.slane %v506_v23, 7  ;;  %v551_v30 = vperm.slane %v506_v23, 6  ;;  %v544_v31 = vperm.slane %v506_v23, 5 }
  0xcf   : > { %535 = vperm.xlu2 %1028, %v530_v24   ;;  %521 = vperm.xlu1 %1027, %v516_v25  }
  0xd0   : > { %514 = vperm.xlu0 %1026, %v509_v26  }
  0xd7   : > { %542 = vperm.xlu2 %1028, %v537_v27   ;;  %528 = vperm.xlu1 %1027, %v523_v28  }
  0xd8   : > { %563 = vperm.xlu0 %1026, %v558_v29  }
  0xdf   : > { %556 = vperm.xlu2 %1028, %v551_v30   ;;  %549 = vperm.xlu1 %1027, %v544_v31  }
 0x129   : > { %v536_v32 = vpop.permute.xlu2 %535 }
 0x12a   : > { %v569_v36 = vmul.f32 %v1362_v34, %v536_v32 }
 0x12c   : > { %v578_v38 = vadd.f32 %v1364_v35, %v569_v36 }
 0x12e   : > { %v594_v42 = vmul.f32 0.01, %v578_v38  ;;  %vm586_vm5 = vcmp.ge.f32.partialorder %v578_v38, 0.0 }
 0x130   : > { %v602_v50 = vsel %vm586_vm5, %v578_v38, %v594_v42 }
 0x131   : > { %v543_v33 = vpop.permute.xlu2 %542  ;;  %v630_v57 = vsel %vm448_vm4, %v602_v50, 0.0 }
 0x132   : > { %v570_v39 = vmul.f32 %v1362_v34, %v543_v33  ;;  %v631_v7 = vrot.slane %v630_v57, 4 }
 0x134   : > { %v579_v43 = vadd.f32 %v1364_v35, %v570_v39  ;;  %v632_v21 = vadd.f32 %v631_v7, %v630_v57 }
 0x136   : > { %v595_v51 = vmul.f32 0.01, %v579_v43  ;;  %vm587_vm6 = vcmp.ge.f32.partialorder %v579_v43, 0.0  ;;  %v633_v36 = vrot.slane %v632_v21, 2 }
 0x138   : > { %v603_v58 = vsel %vm587_vm6, %v579_v43, %v595_v51 }
 0x139   : > { %v557_v37 = vpop.permute.xlu2 %556  ;;  %v637_v8 = vsel %vm448_vm4, %v603_v58, 0.0 }
 0x13a   : > { %v572_v40 = vmul.f32 %v1362_v34, %v557_v37  ;;  %v638_v17 = vrot.slane %v637_v8, 4 }
 0x13c   : > { %v581_v45 = vadd.f32 %v1364_v35, %v572_v40  ;;  %v639_v32 = vadd.f32 %v638_v17, %v637_v8  ;;  %v1032_v17 = vld [vmem:[#allocation6 + $0x2] ss:$0 sm:$0xff] }
 0x13e   : > { %v597_v53 = vmul.f32 0.01, %v581_v45  ;;  %vm589_vm8 = vcmp.ge.f32.partialorder %v581_v45, 0.0 }
 0x140   : > { %v605_v62 = vsel %vm589_vm8, %v581_v45, %v597_v53  ;;  %v640_v45 = vrot.slane %v639_v32, 2 }
 0x141   : > { %v522_v44 = vpop.permute.xlu1 %521  ;;  %v651_v11 = vsel %vm448_vm4, %v605_v62, 0.0 }
 0x142   : > { %v567_v46 = vmul.f32 %v1362_v34, %v522_v44  ;;  %v515_v47 = vpop.permute.xlu0 %514  ;;  %v652_v22 = vrot.slane %v651_v11, 4 }
 0x143   : > { %v566_v48 = vmul.f32 %v1362_v34, %v515_v47 }
 0x144   : > { %v576_v49 = vadd.f32 %v1364_v35, %v567_v46  ;;  %v653_v39 = vadd.f32 %v652_v22, %v651_v11  ;;  %v634_v46 = vadd.f32 %v633_v36, %v632_v21  ;;  %v607_v11 = vld [vmem:[#allocation2] sm:$0xff] }
 0x145   : > { %v575_v52 = vadd.f32 %v1364_v35, %v566_v48 }
 0x146   : > { %vm584_vm7 = vcmp.ge.f32.partialorder %v576_v49, 0.0  ;;  %v592_v54 = vmul.f32 0.01, %v576_v49 }
 0x147   : > { %vm583_vm9 = vcmp.ge.f32.partialorder %v575_v52, 0.0  ;;  %v591_v55 = vmul.f32 0.01, %v575_v52 }
 0x148   : > { %v600_v56 = vsel %vm584_vm7, %v576_v49, %v592_v54  ;;  %v654_v49 = vrot.slane %v653_v39, 2 }
 0x149   : > { %v616_v59 = vsel %vm448_vm4, %v600_v56, 0.0  ;;  %v599_v60 = vsel %vm583_vm9, %v575_v52, %v591_v55  ;;  %v529_v61 = vpop.permute.xlu1 %528  ;;  %v635_v55 = vrot.slane %v634_v46, 1 }
 0x14a   : > { %v617_v63 = vrot.slane %v616_v59, 4  ;;  %v609_v0 = vsel %vm448_vm4, %v599_v60, 0.0  ;;  %v568_v1 = vmul.f32 %v1362_v34, %v529_v61  ;;  %v564_v2 = vpop.permute.xlu0 %563  ;;  %v655_v58 = vadd.f32 %v654_v49, %v653_v39  ;;  %v1034_v49 = vld [vmem:[#allocation6 + $0x4] ss:$0 sm:$0xff] }
 0x14b   : > { %v610_v3 = vrot.slane %v609_v0, 4  ;;  %v573_v4 = vmul.f32 %v1362_v34, %v564_v2 }
 0x14c   : > { %v618_v9 = vadd.f32 %v617_v63, %v616_v59  ;;  %v577_v10 = vadd.f32 %v1364_v35, %v568_v1  ;;  %v656_v2 = vrot.slane %v655_v58, 1 }
 0x14d   : > { %v611_v12 = vadd.f32 %v610_v3, %v609_v0  ;;  %v582_v13 = vadd.f32 %v1364_v35, %v573_v4  ;;  %v636_v0 = vadd.f32 %v635_v55, %v634_v46  ;;  %v1033_v46 = vld [vmem:[#allocation6 + $0x3] ss:$0 sm:$0xff] }
 0x14e   : > { %v619_v15 = vrot.slane %v618_v9, 2  ;;  %vm585_vm10 = vcmp.ge.f32.partialorder %v577_v10, 0.0  ;;  %v593_v16 = vmul.f32 0.01, %v577_v10  ;;  %v657_v8 = vadd.f32 %v656_v2, %v655_v58 }
 0x14f   : > { %v612_v18 = vrot.slane %v611_v12, 2  ;;  %vm590_vm11 = vcmp.ge.f32.partialorder %v582_v13, 0.0  ;;  %v598_v19 = vmul.f32 0.01, %v582_v13 }
 0x150   : > { %v601_v23 = vsel %vm585_vm10, %v577_v10, %v593_v16  ;;  %v620_v24 = vadd.f32 %v619_v15, %v618_v9 }
 0x151   : > { %v613_v25 = vadd.f32 %v612_v18, %v611_v12  ;;  %v623_v26 = vsel %vm448_vm4, %v601_v23, 0.0  ;;  %v606_v27 = vsel %vm590_vm11, %v582_v13, %v598_v19  ;;  %v550_v28 = vpop.permute.xlu1 %549  ;;  %v725_v19 = vld [vmem:[%s1338_s5] sm:$0xff]  ;;  %v1192_v23 = vmov 32.0   ;;  %s946_s5 = sshll.u32 %s1179_s27, 3  ;;  %s762_s27 = scalar_lea.sflag [#allocation5], %s1332_s20 }
 0x152   : > { %v624_v29 = vrot.slane %v623_v26, 4  ;;  %v658_v30 = vsel %vm448_vm4, %v606_v27, 0.0  ;;  %v571_v31 = vmul.f32 %v1362_v34, %v550_v28  ;;  %v621_v40 = vrot.slane %v620_v24, 1  ;;  %s773_s17 = scalar_lea.hbm %s1456_s7, %s946_s5 }
 0x153   : > { %v659_v33 = vrot.slane %v658_v30, 4  ;;  %v614_v41 = vrot.slane %v613_v25, 1  ;;  %1037 = vrcp.f32 %v1192_v23  ;;  %s777_s8 = sshll.u32 %s773_s17, 4  ;;  %s778_s8 = int_to_ptr.hbm [resolvable:$true] %s777_s8 }
 0x154   : > { %v625_v37 = vadd.f32 %v624_v29, %v623_v26  ;;  %v580_v38 = vadd.f32 %v1364_v35, %v571_v31  ;;  %v622_v34 = vadd.f32 %v621_v40, %v620_v24  ;;  %v641_v35 = vadd.f32 %v640_v45, %v639_v32  ;;  %s1115_s0 = sshra.s32 %s778_s8, 4  ;;  %s1116_s0 = int_to_ptr.hbm [resolvable:$true] %s1115_s0 }
 0x155   : > { %v660_v43 = vadd.f32 %v659_v33, %v658_v30  ;;  %v615_v51 = vadd.f32 %v614_v41, %v613_v25  ;;  %s1117_s23 = scalar_lea.hbm %s1116_s0, 8  ;;  %p1122_p12 = scmp.lt.s32.totalorder %s1116_s0, %s1456_s7 }
 0x156   : > { %v626_v42 = vrot.slane %v625_v37, 2  ;;  %vm588_vm12 = vcmp.ge.f32.partialorder %v580_v38, 0.0  ;;  %v596_v44 = vmul.f32 0.01, %v580_v38  ;;  %v642_v62 = vrot.slane %v641_v35, 1  ;;  %p1118_p1 = scmp.ne.s32.totalorder %s1116_s0, %s1117_s23  ;;  %p1123_p13 = scmp.lt.s32.totalorder %s1121_s16, %s1117_s23 }
 0x157   : > { %v661_v53 = vrot.slane %v660_v43, 2  ;;  %v674_v59 = vsel %vm673_vm13, %v622_v34, %v615_v51 }
 0x158   : > { %v627_v47 = vadd.f32 %v626_v42, %v625_v37  ;;  %v604_v48 = vsel %vm588_vm12, %v580_v38, %v596_v44  ;;  %v643_v6 = vadd.f32 %v642_v62, %v641_v35  ;;  %p1119_p4 = pnand %p1118_p1, %p1312_p5  ;;  %p1124_p0 = por %p1123_p13, %p1122_p12 }
 0x159   : > { %v644_v50 = vsel %vm448_vm4, %v604_v48, 0.0  ;;  %v662_v60 = vadd.f32 %v661_v53, %v660_v43  ;;  %v1038_v24 = vpop.eup %1037 }
 0x15a   : > { %v628_v52 = vrot.slane %v627_v47, 1  ;;  %v645_v54 = vrot.slane %v644_v50, 4  ;;  %v731_v25 = vmul.f32 32.0, %v1038_v24  ;;  %vm735_vm5 = vweird.f32 %v1038_v24  ;;  %p1120_p11 = pneg %p1119_p4 }
 0x15b   : > { %v663_v4 = vrot.slane %v662_v60, 1 }
 0x15c   : > { %v629_v56 = vadd.f32 %v628_v52, %v627_v47  ;;  %v646_v57 = vadd.f32 %v645_v54, %v644_v50  ;;  %v732_v26 = vsub.f32 1.0, %v731_v25  ;;  %p1125_p3 = pnand %p1124_p0, %p1120_p11 }
 0x15d   : > { %v664_v10 = vadd.f32 %v663_v4, %v662_v60 }
 0x15e   : > { %v647_v61 = vrot.slane %v646_v57, 2  ;;  %v676_v63 = vsel %vm675_vm14, %v629_v56, %v674_v59  ;;  %v733_v27 = vmul.f32 %v1038_v24, %v732_v26 }
 0x15f   : > { %v678_v3 = vsel %vm677_vm15, %v636_v0, %v676_v63 }
 0x160   : > { %v648_v1 = vadd.f32 %v647_v61, %v646_v57  ;;  %v680_v9 = vsel %vm679_vm0, %v643_v6, %v678_v3  ;;  %v734_v28 = vadd.f32 %v1038_v24, %v733_v27 }
 0x162   : > { %v649_v5 = vrot.slane %v648_v1, 1  ;;  %v736_v29 = vsel %vm735_vm5, %v1038_v24, %v734_v28 }
 0x164   : > { %v650_v7 = vadd.f32 %v649_v5, %v648_v1 }
 0x166   : > { %v682_v12 = vsel %vm681_vm1, %v650_v7, %v680_v9 }
 0x167   : > { %v684_v13 = vsel %vm683_vm2, %v657_v8, %v682_v12 }
 0x168   : > { %v686_v14 = vsel %vm685_vm3, %v664_v10, %v684_v13 }
 0x169   : > { %v688_v15 = vadd.f32 %v686_v14, %v607_v11 }
 0x16b   : > { %689 = vst.msk [vmem:[#allocation2] sm:$0xff] %vm448_vm4, %v688_v15 }
 0x172   : > { %v696_v16 = vld [vmem:[#allocation2] sm:$0xff] }
 0x173   : > { %944 = vmatmul.msk.f32.vlgmr.msra.gmra.mxu1 %vm448_vm4, %v696_v16 }
 0x1f0   : > { %v722_v18 = vpop.f32.mrf.mxu1 }
 0x1f1   : > { %v723_v20 = vadd.f32 %v1032_v17, %v722_v18 }
 0x1f3   : > { %v726_v21 = vadd.f32 %v725_v19, %v723_v20 }
 0x1f5   : > { %v727_v22 = vsel %vm448_vm4, %v726_v21, 0.0 }
 0x1f6   : > { %728 = vadd.xlane.f32.xlu1 %v727_v22 }
 0x269   : > { %v729_v30 = vpop.xlane.xlu1 %728 }
 0x26a   : > { %v737_v31 = vmul.f32 %v736_v29, %v729_v30 }
 0x26c   : > { %v738_v32 = vsub.f32 %v726_v21, %v737_v31 }
 0x26e   : > { %v739_v33 = vmul.f32 %v738_v32, %v738_v32 }
 0x270   : > { %v740_v36 = vsel %vm448_vm4, %v739_v33, 0.0 }
 0x271   : > { %741 = vadd.xlane.f32.xlu2 %v740_v36 }
 0x2e4   : > { %v742_v37 = vpop.xlane.xlu2 %741 }
 0x2e5   : > { %v743_v38 = vmul.f32 %v742_v37, %v736_v29 }
 0x2e7   : > { %v744_v39 = vadd.f32 1e-05, %v743_v38 }
 0x2e9   : > { %1039 = vrsqrt.f32 %v744_v39  ;;  %vm751_vm7 = vweird.f32 %v744_v39 }
 0x2ef   : > { %v1040_v40 = vpop.eup %1039 }
 0x2f0   : > { %v746_v41 = vmul.f32 %v1040_v40, %v744_v39  ;;  %vm752_vm6 = vweird.f32 %v1040_v40 }
 0x2f1   : > { %vm753_vm8 = vmor %vm751_vm7, %vm752_vm6 }
 0x2f2   : > { %v747_v42 = vmul.f32 %v1040_v40, %v746_v41 }
 0x2f4   : > { %v748_v43 = vmul.f32 0.5, %v747_v42 }
 0x2f6   : > { %v749_v44 = vsub.f32 1.5, %v748_v43 }
 0x2f8   : > { %v750_v45 = vmul.f32 %v1040_v40, %v749_v44 }
 0x2fa   : > { %v754_v47 = vsel %vm753_vm8, %v1040_v40, %v750_v45 }
 0x2fb   : > { %v755_v48 = vmul.f32 %v754_v47, %v738_v32 }
 0x2fd   : > { %v757_v34 = vmul.f32 %v1033_v46, %v755_v48 }
 0x2ff   : > { %v759_v50 = vadd.f32 %v1034_v49, %v757_v34 }
 0x301   : > { %760 = vst.msk [vmem:[%s416_s18] sm:$0xff] %vm448_vm4, %v759_v50 }
 0x302   : > { %1128 = shalt.err (!%p1125_p3)
}
 0x303   : > { %955 = dma.vmem_to_hbm [thread:$0]  (%p1312_p5), %s776_s10, 128, %s778_s8, %s762_s27  }
 0x304 PF: > { %s1474_s20 = sld [smem:[#allocation12_spill]]  ;;  %p966_p7 = pnand %p932_p9, %p1282_p6 }
 0x306   : > { %p967_p10 = pneg %p966_p7 }
 0x30a   : > { %s789_s5 = sand.u32 1, %s1474_s20  }
 0x30b   : > { %s790_s11 = scalar_lea.sflag [#allocation5], %s789_s5 }
 0x30c   : > { %1162 = dma.done.wait (%p967_p10), %s790_s11, 128  }
 0x30d   : > { %1164 = vsyncadd (%p967_p10), %s790_s11, 4294967168  ;;  %s24_s29 = sadd.s32 1, %s1187_s29   ;;  %s1476_s24 = smov %s1171_s25 }
 0x30e   : > { %p21_p2 = scmp.ge.s32.totalorder %s24_s29, 4   ;;  %s1477_s25 = smov %s1175_s26 }
 0x30f   : > { %s1478_s26 = smov %s1321_s13  ;;  %s1479_s27 = smov %s1183_s28 }
 0x310   : > { %s1480_s28 = smov %s1482_s19  ;;  %23 = sbr.rel (!%p21_p2) target bundleno = 10 (0xa), region = 117 }
 0x315   :  { %796 = vsyncpa [#allocation4], 1 }
 0x316   :  { %798 = vsyncpa [#allocation4 + $0x1], 1 }
 0x317   :  { %799 = vsyncpa [#allocation7], 1 }
 0x318   :  { %800 = vsyncpa [#allocation5], 1 }
 0x319   :  { %802 = vsyncpa [#allocation5 + $0x1], 1 }

</bundles_post_ra>
